<compile_context>
chip_gen: v7x
topology: tpu7x:2x2x1
jax: 0.10.0
libtpu: 0.0.40
codegen_flags: <defaults>
</compile_context>

<pallas_src>
import numpy as np
import jax
import jax.numpy as jnp
from jax.experimental import pallas as pl
from jax.experimental.pallas import tpu as pltpu

# ------------------------- configuration (small, module-consistent) -------------------------
N = 16                   # batch of latent vectors
HALF = N // 2            # two independent 8-row sub-tiles (sublane-aligned)
D = 128                  # mapping_fmaps == dlatent_size (scaled down from 512; lane-dense)
NUM_FC = 8               # G_mapping.func = 8 FC layers
RESOLUTION = 1024
NUM_LAYERS = int(np.log2(RESOLUTION)) * 2 - 2   # = 18, returned alongside the output
EPS = 1e-8               # PixelNorm epsilon
NEG_SLOPE = 0.2          # LeakyReLU slope
GAIN = 2.0 ** 0.5
LRMUL = 0.01


# ------------------------------------ kernel body ------------------------------------
def mapping_kernel(x_ref, w_ref, b_ref, o_ref):
    """PixelNorm + 8 x (FC + LeakyReLU) fully fused on one VMEM-resident tile.

    x_ref : (N, D)  f32      latent batch
    w_ref : (NUM_FC, D, D)  bf16  effective FC weights (wscale/lrmul folded; x @ W layout)
    b_ref : (NUM_FC, 1, D)  f32   effective FC biases (lrmul folded)
    o_ref : (N, D)  f32      dlatents
    """
    y = x_ref[...]
    # PixelNorm (f32, rsqrt on the EUP): x * rsqrt(mean(x^2, feature axis) + eps)
    y = y * jax.lax.rsqrt(jnp.mean(y * y, axis=-1, keepdims=True) + EPS)

    # Two independent dependency chains through the 8 layers: dot(A), dot(B)
    # issued back-to-back per layer so MXU latency of one half hides the other.
    ya = y[:HALF]
    yb = y[HALF:]
    for i in range(NUM_FC):
        w = w_ref[i]                      # (D, D) bf16, VMEM resident
        b = b_ref[i]                      # (1, D) f32
        za = jnp.dot(ya.astype(jnp.bfloat16), w,
                     preferred_element_type=jnp.float32) + b
        zb = jnp.dot(yb.astype(jnp.bfloat16), w,
                     preferred_element_type=jnp.float32) + b
        # LeakyReLU(0.2) epilogue stays in f32 on the VPU.
        ya = jnp.where(za >= 0.0, za, NEG_SLOPE * za)
        yb = jnp.where(zb >= 0.0, zb, NEG_SLOPE * zb)

    o_ref[:HALF, :] = ya                  # sublane-aligned unmasked stores
    o_ref[HALF:, :] = yb


# ------------------------------------ pallas_call wrapper ------------------------------------
def g_mapping_forward(x, w_all, b_all):
    """G_mapping.forward: returns (dlatents, num_layers).

    No grid: everything (x 8 KiB, W bf16 256 KiB, b 4 KiB, out 8 KiB) lives in VMEM
    for a single invocation -- no pipeline steps, no double buffers, no megacore
    split duplicating the weight DMA at this tiny batch size.
    """
    out = pl.pallas_call(
        mapping_kernel,
        out_shape=jax.ShapeDtypeStruct((N, D), jnp.float32),
        in_specs=[
            pl.BlockSpec(memory_space=pltpu.MemorySpace.VMEM),   # x
            pl.BlockSpec(memory_space=pltpu.MemorySpace.VMEM),   # stacked weights (bf16)
            pl.BlockSpec(memory_space=pltpu.MemorySpace.VMEM),   # stacked biases
        ],
        out_specs=pl.BlockSpec(memory_space=pltpu.MemorySpace.VMEM),
    )(x, w_all, b_all)
    return out, NUM_LAYERS


# ------------------------------------ parameter init (glue) ------------------------------------
def init_params(key):
    """Replicates FC(in, out, gain, lrmul, use_wscale=True) init, folding the runtime
    w_lrmul / b_lrmul multipliers into effective weights so the kernel does
    x @ W_eff + b_eff.  Weights are stored in bf16 (MXU inputs); biases stay f32."""
    kw, kb = jax.random.split(key, 2)
    he_std = GAIN * (D ** -0.5)          # gain * in_channels**-0.5 (in == out == D here)
    init_std = 1.0 / LRMUL               # use_wscale=True
    w_lrmul = he_std * LRMUL

    w_raw = init_std * jax.random.normal(kw, (NUM_FC, D, D), jnp.float32)   # (layer, out, in)
    # F.linear(x, W) == x @ W.T  ->  effective kernel weight is (in, out) per layer.
    w_eff = jnp.transpose(w_raw * w_lrmul, (0, 2, 1)).astype(jnp.bfloat16)  # (NUM_FC, D, D) bf16

    # torch inits bias to zeros; small random values here to exercise the bias path.
    b_raw = jax.random.normal(kb, (NUM_FC, 1, D), jnp.float32)
    b_eff = b_raw * LRMUL                                                   # b * b_lrmul
    return w_eff, b_eff


# ------------------------------------ pure-JAX reference ------------------------------------
def reference(x, w_all_bf16, b_all):
    """Mirrors the kernel's numerics: f32 epilogue, bf16-quantized dot inputs,
    f32 accumulation (only summation order differs from the MXU)."""
    hi = jax.lax.Precision.HIGHEST
    w_f32 = w_all_bf16.astype(jnp.float32)
    y = x * jax.lax.rsqrt(jnp.mean(x * x, axis=-1, keepdims=True) + EPS)
    for i in range(NUM_FC):
        yq = y.astype(jnp.bfloat16).astype(jnp.float32)   # same quantization as kernel dot input
        y = jnp.dot(yq, w_f32[i], precision=hi) + b_all[i]
        y = jnp.where(y >= 0.0, y, NEG_SLOPE * y)
    return y


# ------------------------------------ main ------------------------------------
if __name__ == "__main__":
    key = jax.random.PRNGKey(0)
    k_x, k_p = jax.random.split(key)

    x = jax.random.normal(k_x, (N, D), jnp.float32)
    w_all, b_all = init_params(k_p)

    out, num_layers = jax.jit(g_mapping_forward)(x, w_all, b_all)
    out = jax.block_until_ready(out)

    assert out.shape == (N, D) and out.dtype == jnp.float32
    assert num_layers == 18
    ref = reference(x, w_all, b_all)
    assert bool(jnp.allclose(out, ref, rtol=1e-2, atol=1e-2)), "Pallas G_mapping mismatch vs reference"

    print("KERNEL_OK")
</pallas_src>

<mosaic_0001>
module attributes {stable_mosaic.version = 11 : i64} {
  func.func @mapping_kernel(%arg0: memref<16x128xf32, #tpu.memory_space<vmem>>, %arg1: memref<8x128x128xbf16, #tpu.memory_space<vmem>>, %arg2: memref<8x1x128xf32, #tpu.memory_space<vmem>>, %arg3: memref<16x128xf32, #tpu.memory_space<vmem>>) attributes {dimension_semantics = [], scalar_prefetch = 0 : i64, scratch_operands = 0 : i64, tpu.core_type = #tpu.core_type<tc>} {
    %c0 = arith.constant 0 : index
    %c0_0 = arith.constant 0 : index
    %0 = vector.load %arg0[%c0, %c0_0] : memref<16x128xf32, #tpu.memory_space<vmem>>, vector<16x128xf32>
    %1 = arith.mulf %0, %0 : vector<16x128xf32>
    %cst = arith.constant dense<0.000000e+00> : vector<16xf32>
    %2 = vector.multi_reduction <add>, %1, %cst [1] : vector<16x128xf32> to vector<16xf32>
    %3 = vector.shape_cast %2 : vector<16xf32> to vector<16x1xf32>
    %cst_1 = arith.constant 1.280000e+02 : f32
    %4 = vector.broadcast %cst_1 : f32 to vector<16x1xf32>
    %5 = arith.divf %3, %4 : vector<16x1xf32>
    %cst_2 = arith.constant 9.99999993E-9 : f32
    %6 = vector.broadcast %cst_2 : f32 to vector<16x1xf32>
    %7 = arith.addf %5, %6 : vector<16x1xf32>
    %8 = math.rsqrt %7 : vector<16x1xf32>
    %9 = vector.broadcast %8 : vector<16x1xf32> to vector<16x128xf32>
    %10 = arith.mulf %0, %9 : vector<16x128xf32>
    %11 = vector.extract_strided_slice %10 {offsets = [0, 0], sizes = [8, 128], strides = [1, 1]} : vector<16x128xf32> to vector<8x128xf32>
    %12 = vector.extract_strided_slice %10 {offsets = [8, 0], sizes = [8, 128], strides = [1, 1]} : vector<16x128xf32> to vector<8x128xf32>
    %c0_3 = arith.constant 0 : index
    %c0_4 = arith.constant 0 : index
    %c0_5 = arith.constant 0 : index
    %13 = vector.load %arg1[%c0_3, %c0_4, %c0_5] : memref<8x128x128xbf16, #tpu.memory_space<vmem>>, vector<1x128x128xbf16>
    %14 = vector.shape_cast %13 : vector<1x128x128xbf16> to vector<128x128xbf16>
    %c0_6 = arith.constant 0 : index
    %c0_7 = arith.constant 0 : index
    %c0_8 = arith.constant 0 : index
    %15 = vector.load %arg2[%c0_6, %c0_7, %c0_8] : memref<8x1x128xf32, #tpu.memory_space<vmem>>, vector<1x1x128xf32>
    %16 = vector.shape_cast %15 : vector<1x1x128xf32> to vector<1x128xf32>
    %17 = arith.truncf %11 : vector<8x128xf32> to vector<8x128xbf16>
    %cst_9 = arith.constant dense<0.000000e+00> : vector<8x128xf32>
    %18 = tpu.matmul %17, %14, %cst_9 {dimension_numbers = #tpu.dot_dimension_numbers<[1], [0], [0], [1], [0, 0, 1, 1], [], []>} : vector<8x128xbf16>, vector<128x128xbf16>, vector<8x128xf32> -> vector<8x128xf32>
    %19 = vector.broadcast %16 : vector<1x128xf32> to vector<8x128xf32>
    %20 = arith.addf %18, %19 : vector<8x128xf32>
    %21 = arith.truncf %12 : vector<8x128xf32> to vector<8x128xbf16>
    %cst_10 = arith.constant dense<0.000000e+00> : vector<8x128xf32>
    %22 = tpu.matmul %21, %14, %cst_10 {dimension_numbers = #tpu.dot_dimension_numbers<[1], [0], [0], [1], [0, 0, 1, 1], [], []>} : vector<8x128xbf16>, vector<128x128xbf16>, vector<8x128xf32> -> vector<8x128xf32>
    %23 = vector.broadcast %16 : vector<1x128xf32> to vector<8x128xf32>
    %24 = arith.addf %22, %23 : vector<8x128xf32>
    %cst_11 = arith.constant 0.000000e+00 : f32
    %25 = vector.broadcast %cst_11 : f32 to vector<8x128xf32>
    %26 = arith.cmpf oge, %20, %25 : vector<8x128xf32>
    %cst_12 = arith.constant 2.000000e-01 : f32
    %27 = vector.broadcast %cst_12 : f32 to vector<8x128xf32>
    %28 = arith.mulf %27, %20 : vector<8x128xf32>
    %29 = arith.select %26, %20, %28 : vector<8x128xi1>, vector<8x128xf32>
    %cst_13 = arith.constant 0.000000e+00 : f32
    %30 = vector.broadcast %cst_13 : f32 to vector<8x128xf32>
    %31 = arith.cmpf oge, %24, %30 : vector<8x128xf32>
    %cst_14 = arith.constant 2.000000e-01 : f32
    %32 = vector.broadcast %cst_14 : f32 to vector<8x128xf32>
    %33 = arith.mulf %32, %24 : vector<8x128xf32>
    %34 = arith.select %31, %24, %33 : vector<8x128xi1>, vector<8x128xf32>
    %c1 = arith.constant 1 : index
    %c0_15 = arith.constant 0 : index
    %c0_16 = arith.constant 0 : index
    %35 = vector.load %arg1[%c1, %c0_15, %c0_16] : memref<8x128x128xbf16, #tpu.memory_space<vmem>>, vector<1x128x128xbf16>
    %36 = vector.shape_cast %35 : vector<1x128x128xbf16> to vector<128x128xbf16>
    %c1_17 = arith.constant 1 : index
    %c0_18 = arith.constant 0 : index
    %c0_19 = arith.constant 0 : index
    %37 = vector.load %arg2[%c1_17, %c0_18, %c0_19] : memref<8x1x128xf32, #tpu.memory_space<vmem>>, vector<1x1x128xf32>
    %38 = vector.shape_cast %37 : vector<1x1x128xf32> to vector<1x128xf32>
    %39 = arith.truncf %29 : vector<8x128xf32> to vector<8x128xbf16>
    %cst_20 = arith.constant dense<0.000000e+00> : vector<8x128xf32>
    %40 = tpu.matmul %39, %36, %cst_20 {dimension_numbers = #tpu.dot_dimension_numbers<[1], [0], [0], [1], [0, 0, 1, 1], [], []>} : vector<8x128xbf16>, vector<128x128xbf16>, vector<8x128xf32> -> vector<8x128xf32>
    %41 = vector.broadcast %38 : vector<1x128xf32> to vector<8x128xf32>
    %42 = arith.addf %40, %41 : vector<8x128xf32>
    %43 = arith.truncf %34 : vector<8x128xf32> to vector<8x128xbf16>
    %cst_21 = arith.constant dense<0.000000e+00> : vector<8x128xf32>
    %44 = tpu.matmul %43, %36, %cst_21 {dimension_numbers = #tpu.dot_dimension_numbers<[1], [0], [0], [1], [0, 0, 1, 1], [], []>} : vector<8x128xbf16>, vector<128x128xbf16>, vector<8x128xf32> -> vector<8x128xf32>
    %45 = vector.broadcast %38 : vector<1x128xf32> to vector<8x128xf32>
    %46 = arith.addf %44, %45 : vector<8x128xf32>
    %cst_22 = arith.constant 0.000000e+00 : f32
    %47 = vector.broadcast %cst_22 : f32 to vector<8x128xf32>
    %48 = arith.cmpf oge, %42, %47 : vector<8x128xf32>
    %cst_23 = arith.constant 2.000000e-01 : f32
    %49 = vector.broadcast %cst_23 : f32 to vector<8x128xf32>
    %50 = arith.mulf %49, %42 : vector<8x128xf32>
    %51 = arith.select %48, %42, %50 : vector<8x128xi1>, vector<8x128xf32>
    %cst_24 = arith.constant 0.000000e+00 : f32
    %52 = vector.broadcast %cst_24 : f32 to vector<8x128xf32>
    %53 = arith.cmpf oge, %46, %52 : vector<8x128xf32>
    %cst_25 = arith.constant 2.000000e-01 : f32
    %54 = vector.broadcast %cst_25 : f32 to vector<8x128xf32>
    %55 = arith.mulf %54, %46 : vector<8x128xf32>
    %56 = arith.select %53, %46, %55 : vector<8x128xi1>, vector<8x128xf32>
    %c2 = arith.constant 2 : index
    %c0_26 = arith.constant 0 : index
    %c0_27 = arith.constant 0 : index
    %57 = vector.load %arg1[%c2, %c0_26, %c0_27] : memref<8x128x128xbf16, #tpu.memory_space<vmem>>, vector<1x128x128xbf16>
    %58 = vector.shape_cast %57 : vector<1x128x128xbf16> to vector<128x128xbf16>
    %c2_28 = arith.constant 2 : index
    %c0_29 = arith.constant 0 : index
    %c0_30 = arith.constant 0 : index
    %59 = vector.load %arg2[%c2_28, %c0_29, %c0_30] : memref<8x1x128xf32, #tpu.memory_space<vmem>>, vector<1x1x128xf32>
    %60 = vector.shape_cast %59 : vector<1x1x128xf32> to vector<1x128xf32>
    %61 = arith.truncf %51 : vector<8x128xf32> to vector<8x128xbf16>
    %cst_31 = arith.constant dense<0.000000e+00> : vector<8x128xf32>
    %62 = tpu.matmul %61, %58, %cst_31 {dimension_numbers = #tpu.dot_dimension_numbers<[1], [0], [0], [1], [0, 0, 1, 1], [], []>} : vector<8x128xbf16>, vector<128x128xbf16>, vector<8x128xf32> -> vector<8x128xf32>
    %63 = vector.broadcast %60 : vector<1x128xf32> to vector<8x128xf32>
    %64 = arith.addf %62, %63 : vector<8x128xf32>
    %65 = arith.truncf %56 : vector<8x128xf32> to vector<8x128xbf16>
    %cst_32 = arith.constant dense<0.000000e+00> : vector<8x128xf32>
    %66 = tpu.matmul %65, %58, %cst_32 {dimension_numbers = #tpu.dot_dimension_numbers<[1], [0], [0], [1], [0, 0, 1, 1], [], []>} : vector<8x128xbf16>, vector<128x128xbf16>, vector<8x128xf32> -> vector<8x128xf32>
    %67 = vector.broadcast %60 : vector<1x128xf32> to vector<8x128xf32>
    %68 = arith.addf %66, %67 : vector<8x128xf32>
    %cst_33 = arith.constant 0.000000e+00 : f32
    %69 = vector.broadcast %cst_33 : f32 to vector<8x128xf32>
    %70 = arith.cmpf oge, %64, %69 : vector<8x128xf32>
    %cst_34 = arith.constant 2.000000e-01 : f32
    %71 = vector.broadcast %cst_34 : f32 to vector<8x128xf32>
    %72 = arith.mulf %71, %64 : vector<8x128xf32>
    %73 = arith.select %70, %64, %72 : vector<8x128xi1>, vector<8x128xf32>
    %cst_35 = arith.constant 0.000000e+00 : f32
    %74 = vector.broadcast %cst_35 : f32 to vector<8x128xf32>
    %75 = arith.cmpf oge, %68, %74 : vector<8x128xf32>
    %cst_36 = arith.constant 2.000000e-01 : f32
    %76 = vector.broadcast %cst_36 : f32 to vector<8x128xf32>
    %77 = arith.mulf %76, %68 : vector<8x128xf32>
    %78 = arith.select %75, %68, %77 : vector<8x128xi1>, vector<8x128xf32>
    %c3 = arith.constant 3 : index
    %c0_37 = arith.constant 0 : index
    %c0_38 = arith.constant 0 : index
    %79 = vector.load %arg1[%c3, %c0_37, %c0_38] : memref<8x128x128xbf16, #tpu.memory_space<vmem>>, vector<1x128x128xbf16>
    %80 = vector.shape_cast %79 : vector<1x128x128xbf16> to vector<128x128xbf16>
    %c3_39 = arith.constant 3 : index
    %c0_40 = arith.constant 0 : index
    %c0_41 = arith.constant 0 : index
    %81 = vector.load %arg2[%c3_39, %c0_40, %c0_41] : memref<8x1x128xf32, #tpu.memory_space<vmem>>, vector<1x1x128xf32>
    %82 = vector.shape_cast %81 : vector<1x1x128xf32> to vector<1x128xf32>
    %83 = arith.truncf %73 : vector<8x128xf32> to vector<8x128xbf16>
    %cst_42 = arith.constant dense<0.000000e+00> : vector<8x128xf32>
    %84 = tpu.matmul %83, %80, %cst_42 {dimension_numbers = #tpu.dot_dimension_numbers<[1], [0], [0], [1], [0, 0, 1, 1], [], []>} : vector<8x128xbf16>, vector<128x128xbf16>, vector<8x128xf32> -> vector<8x128xf32>
    %85 = vector.broadcast %82 : vector<1x128xf32> to vector<8x128xf32>
    %86 = arith.addf %84, %85 : vector<8x128xf32>
    %87 = arith.truncf %78 : vector<8x128xf32> to vector<8x128xbf16>
    %cst_43 = arith.constant dense<0.000000e+00> : vector<8x128xf32>
    %88 = tpu.matmul %87, %80, %cst_43 {dimension_numbers = #tpu.dot_dimension_numbers<[1], [0], [0], [1], [0, 0, 1, 1], [], []>} : vector<8x128xbf16>, vector<128x128xbf16>, vector<8x128xf32> -> vector<8x128xf32>
    %89 = vector.broadcast %82 : vector<1x128xf32> to vector<8x128xf32>
    %90 = arith.addf %88, %89 : vector<8x128xf32>
    %cst_44 = arith.constant 0.000000e+00 : f32
    %91 = vector.broadcast %cst_44 : f32 to vector<8x128xf32>
    %92 = arith.cmpf oge, %86, %91 : vector<8x128xf32>
    %cst_45 = arith.constant 2.000000e-01 : f32
    %93 = vector.broadcast %cst_45 : f32 to vector<8x128xf32>
    %94 = arith.mulf %93, %86 : vector<8x128xf32>
    %95 = arith.select %92, %86, %94 : vector<8x128xi1>, vector<8x128xf32>
    %cst_46 = arith.constant 0.000000e+00 : f32
    %96 = vector.broadcast %cst_46 : f32 to vector<8x128xf32>
    %97 = arith.cmpf oge, %90, %96 : vector<8x128xf32>
    %cst_47 = arith.constant 2.000000e-01 : f32
    %98 = vector.broadcast %cst_47 : f32 to vector<8x128xf32>
    %99 = arith.mulf %98, %90 : vector<8x128xf32>
    %100 = arith.select %97, %90, %99 : vector<8x128xi1>, vector<8x128xf32>
    %c4 = arith.constant 4 : index
    %c0_48 = arith.constant 0 : index
    %c0_49 = arith.constant 0 : index
    %101 = vector.load %arg1[%c4, %c0_48, %c0_49] : memref<8x128x128xbf16, #tpu.memory_space<vmem>>, vector<1x128x128xbf16>
    %102 = vector.shape_cast %101 : vector<1x128x128xbf16> to vector<128x128xbf16>
    %c4_50 = arith.constant 4 : index
    %c0_51 = arith.constant 0 : index
    %c0_52 = arith.constant 0 : index
    %103 = vector.load %arg2[%c4_50, %c0_51, %c0_52] : memref<8x1x128xf32, #tpu.memory_space<vmem>>, vector<1x1x128xf32>
    %104 = vector.shape_cast %103 : vector<1x1x128xf32> to vector<1x128xf32>
    %105 = arith.truncf %95 : vector<8x128xf32> to vector<8x128xbf16>
    %cst_53 = arith.constant dense<0.000000e+00> : vector<8x128xf32>
    %106 = tpu.matmul %105, %102, %cst_53 {dimension_numbers = #tpu.dot_dimension_numbers<[1], [0], [0], [1], [0, 0, 1, 1], [], []>} : vector<8x128xbf16>, vector<128x128xbf16>, vector<8x128xf32> -> vector<8x128xf32>
    %107 = vector.broadcast %104 : vector<1x128xf32> to vector<8x128xf32>
    %108 = arith.addf %106, %107 : vector<8x128xf32>
    %109 = arith.truncf %100 : vector<8x128xf32> to vector<8x128xbf16>
    %cst_54 = arith.constant dense<0.000000e+00> : vector<8x128xf32>
    %110 = tpu.matmul %109, %102, %cst_54 {dimension_numbers = #tpu.dot_dimension_numbers<[1], [0], [0], [1], [0, 0, 1, 1], [], []>} : vector<8x128xbf16>, vector<128x128xbf16>, vector<8x128xf32> -> vector<8x128xf32>
    %111 = vector.broadcast %104 : vector<1x128xf32> to vector<8x128xf32>
    %112 = arith.addf %110, %111 : vector<8x128xf32>
    %cst_55 = arith.constant 0.000000e+00 : f32
    %113 = vector.broadcast %cst_55 : f32 to vector<8x128xf32>
    %114 = arith.cmpf oge, %108, %113 : vector<8x128xf32>
    %cst_56 = arith.constant 2.000000e-01 : f32
    %115 = vector.broadcast %cst_56 : f32 to vector<8x128xf32>
    %116 = arith.mulf %115, %108 : vector<8x128xf32>
    %117 = arith.select %114, %108, %116 : vector<8x128xi1>, vector<8x128xf32>
    %cst_57 = arith.constant 0.000000e+00 : f32
    %118 = vector.broadcast %cst_57 : f32 to vector<8x128xf32>
    %119 = arith.cmpf oge, %112, %118 : vector<8x128xf32>
    %cst_58 = arith.constant 2.000000e-01 : f32
    %120 = vector.broadcast %cst_58 : f32 to vector<8x128xf32>
    %121 = arith.mulf %120, %112 : vector<8x128xf32>
    %122 = arith.select %119, %112, %121 : vector<8x128xi1>, vector<8x128xf32>
    %c5 = arith.constant 5 : index
    %c0_59 = arith.constant 0 : index
    %c0_60 = arith.constant 0 : index
    %123 = vector.load %arg1[%c5, %c0_59, %c0_60] : memref<8x128x128xbf16, #tpu.memory_space<vmem>>, vector<1x128x128xbf16>
    %124 = vector.shape_cast %123 : vector<1x128x128xbf16> to vector<128x128xbf16>
    %c5_61 = arith.constant 5 : index
    %c0_62 = arith.constant 0 : index
    %c0_63 = arith.constant 0 : index
    %125 = vector.load %arg2[%c5_61, %c0_62, %c0_63] : memref<8x1x128xf32, #tpu.memory_space<vmem>>, vector<1x1x128xf32>
    %126 = vector.shape_cast %125 : vector<1x1x128xf32> to vector<1x128xf32>
    %127 = arith.truncf %117 : vector<8x128xf32> to vector<8x128xbf16>
    %cst_64 = arith.constant dense<0.000000e+00> : vector<8x128xf32>
    %128 = tpu.matmul %127, %124, %cst_64 {dimension_numbers = #tpu.dot_dimension_numbers<[1], [0], [0], [1], [0, 0, 1, 1], [], []>} : vector<8x128xbf16>, vector<128x128xbf16>, vector<8x128xf32> -> vector<8x128xf32>
    %129 = vector.broadcast %126 : vector<1x128xf32> to vector<8x128xf32>
    %130 = arith.addf %128, %129 : vector<8x128xf32>
    %131 = arith.truncf %122 : vector<8x128xf32> to vector<8x128xbf16>
    %cst_65 = arith.constant dense<0.000000e+00> : vector<8x128xf32>
    %132 = tpu.matmul %131, %124, %cst_65 {dimension_numbers = #tpu.dot_dimension_numbers<[1], [0], [0], [1], [0, 0, 1, 1], [], []>} : vector<8x128xbf16>, vector<128x128xbf16>, vector<8x128xf32> -> vector<8x128xf32>
    %133 = vector.broadcast %126 : vector<1x128xf32> to vector<8x128xf32>
    %134 = arith.addf %132, %133 : vector<8x128xf32>
    %cst_66 = arith.constant 0.000000e+00 : f32
    %135 = vector.broadcast %cst_66 : f32 to vector<8x128xf32>
    %136 = arith.cmpf oge, %130, %135 : vector<8x128xf32>
    %cst_67 = arith.constant 2.000000e-01 : f32
    %137 = vector.broadcast %cst_67 : f32 to vector<8x128xf32>
    %138 = arith.mulf %137, %130 : vector<8x128xf32>
    %139 = arith.select %136, %130, %138 : vector<8x128xi1>, vector<8x128xf32>
    %cst_68 = arith.constant 0.000000e+00 : f32
    %140 = vector.broadcast %cst_68 : f32 to vector<8x128xf32>
    %141 = arith.cmpf oge, %134, %140 : vector<8x128xf32>
    %cst_69 = arith.constant 2.000000e-01 : f32
    %142 = vector.broadcast %cst_69 : f32 to vector<8x128xf32>
    %143 = arith.mulf %142, %134 : vector<8x128xf32>
    %144 = arith.select %141, %134, %143 : vector<8x128xi1>, vector<8x128xf32>
    %c6 = arith.constant 6 : index
    %c0_70 = arith.constant 0 : index
    %c0_71 = arith.constant 0 : index
    %145 = vector.load %arg1[%c6, %c0_70, %c0_71] : memref<8x128x128xbf16, #tpu.memory_space<vmem>>, vector<1x128x128xbf16>
    %146 = vector.shape_cast %145 : vector<1x128x128xbf16> to vector<128x128xbf16>
    %c6_72 = arith.constant 6 : index
    %c0_73 = arith.constant 0 : index
    %c0_74 = arith.constant 0 : index
    %147 = vector.load %arg2[%c6_72, %c0_73, %c0_74] : memref<8x1x128xf32, #tpu.memory_space<vmem>>, vector<1x1x128xf32>
    %148 = vector.shape_cast %147 : vector<1x1x128xf32> to vector<1x128xf32>
    %149 = arith.truncf %139 : vector<8x128xf32> to vector<8x128xbf16>
    %cst_75 = arith.constant dense<0.000000e+00> : vector<8x128xf32>
    %150 = tpu.matmul %149, %146, %cst_75 {dimension_numbers = #tpu.dot_dimension_numbers<[1], [0], [0], [1], [0, 0, 1, 1], [], []>} : vector<8x128xbf16>, vector<128x128xbf16>, vector<8x128xf32> -> vector<8x128xf32>
    %151 = vector.broadcast %148 : vector<1x128xf32> to vector<8x128xf32>
    %152 = arith.addf %150, %151 : vector<8x128xf32>
    %153 = arith.truncf %144 : vector<8x128xf32> to vector<8x128xbf16>
    %cst_76 = arith.constant dense<0.000000e+00> : vector<8x128xf32>
    %154 = tpu.matmul %153, %146, %cst_76 {dimension_numbers = #tpu.dot_dimension_numbers<[1], [0], [0], [1], [0, 0, 1, 1], [], []>} : vector<8x128xbf16>, vector<128x128xbf16>, vector<8x128xf32> -> vector<8x128xf32>
    %155 = vector.broadcast %148 : vector<1x128xf32> to vector<8x128xf32>
    %156 = arith.addf %154, %155 : vector<8x128xf32>
    %cst_77 = arith.constant 0.000000e+00 : f32
    %157 = vector.broadcast %cst_77 : f32 to vector<8x128xf32>
    %158 = arith.cmpf oge, %152, %157 : vector<8x128xf32>
    %cst_78 = arith.constant 2.000000e-01 : f32
    %159 = vector.broadcast %cst_78 : f32 to vector<8x128xf32>
    %160 = arith.mulf %159, %152 : vector<8x128xf32>
    %161 = arith.select %158, %152, %160 : vector<8x128xi1>, vector<8x128xf32>
    %cst_79 = arith.constant 0.000000e+00 : f32
    %162 = vector.broadcast %cst_79 : f32 to vector<8x128xf32>
    %163 = arith.cmpf oge, %156, %162 : vector<8x128xf32>
    %cst_80 = arith.constant 2.000000e-01 : f32
    %164 = vector.broadcast %cst_80 : f32 to vector<8x128xf32>
    %165 = arith.mulf %164, %156 : vector<8x128xf32>
    %166 = arith.select %163, %156, %165 : vector<8x128xi1>, vector<8x128xf32>
    %c7 = arith.constant 7 : index
    %c0_81 = arith.constant 0 : index
    %c0_82 = arith.constant 0 : index
    %167 = vector.load %arg1[%c7, %c0_81, %c0_82] : memref<8x128x128xbf16, #tpu.memory_space<vmem>>, vector<1x128x128xbf16>
    %168 = vector.shape_cast %167 : vector<1x128x128xbf16> to vector<128x128xbf16>
    %c7_83 = arith.constant 7 : index
    %c0_84 = arith.constant 0 : index
    %c0_85 = arith.constant 0 : index
    %169 = vector.load %arg2[%c7_83, %c0_84, %c0_85] : memref<8x1x128xf32, #tpu.memory_space<vmem>>, vector<1x1x128xf32>
    %170 = vector.shape_cast %169 : vector<1x1x128xf32> to vector<1x128xf32>
    %171 = arith.truncf %161 : vector<8x128xf32> to vector<8x128xbf16>
    %cst_86 = arith.constant dense<0.000000e+00> : vector<8x128xf32>
    %172 = tpu.matmul %171, %168, %cst_86 {dimension_numbers = #tpu.dot_dimension_numbers<[1], [0], [0], [1], [0, 0, 1, 1], [], []>} : vector<8x128xbf16>, vector<128x128xbf16>, vector<8x128xf32> -> vector<8x128xf32>
    %173 = vector.broadcast %170 : vector<1x128xf32> to vector<8x128xf32>
    %174 = arith.addf %172, %173 : vector<8x128xf32>
    %175 = arith.truncf %166 : vector<8x128xf32> to vector<8x128xbf16>
    %cst_87 = arith.constant dense<0.000000e+00> : vector<8x128xf32>
    %176 = tpu.matmul %175, %168, %cst_87 {dimension_numbers = #tpu.dot_dimension_numbers<[1], [0], [0], [1], [0, 0, 1, 1], [], []>} : vector<8x128xbf16>, vector<128x128xbf16>, vector<8x128xf32> -> vector<8x128xf32>
    %177 = vector.broadcast %170 : vector<1x128xf32> to vector<8x128xf32>
    %178 = arith.addf %176, %177 : vector<8x128xf32>
    %cst_88 = arith.constant 0.000000e+00 : f32
    %179 = vector.broadcast %cst_88 : f32 to vector<8x128xf32>
    %180 = arith.cmpf oge, %174, %179 : vector<8x128xf32>
    %cst_89 = arith.constant 2.000000e-01 : f32
    %181 = vector.broadcast %cst_89 : f32 to vector<8x128xf32>
    %182 = arith.mulf %181, %174 : vector<8x128xf32>
    %183 = arith.select %180, %174, %182 : vector<8x128xi1>, vector<8x128xf32>
    %cst_90 = arith.constant 0.000000e+00 : f32
    %184 = vector.broadcast %cst_90 : f32 to vector<8x128xf32>
    %185 = arith.cmpf oge, %178, %184 : vector<8x128xf32>
    %cst_91 = arith.constant 2.000000e-01 : f32
    %186 = vector.broadcast %cst_91 : f32 to vector<8x128xf32>
    %187 = arith.mulf %186, %178 : vector<8x128xf32>
    %188 = arith.select %185, %178, %187 : vector<8x128xi1>, vector<8x128xf32>
    %c0_92 = arith.constant 0 : index
    %c0_93 = arith.constant 0 : index
    %189 = vector.load %arg3[%c0_92, %c0_93] : memref<16x128xf32, #tpu.memory_space<vmem>>, vector<8x128xf32>
    tpu.vector_store %arg3[%c0_92, %c0_93], %183 {strides = array<i32>} : memref<16x128xf32, #tpu.memory_space<vmem>>, vector<8x128xf32>,
    %c8 = arith.constant 8 : index
    %c0_94 = arith.constant 0 : index
    %190 = vector.load %arg3[%c8, %c0_94] : memref<16x128xf32, #tpu.memory_space<vmem>>, vector<8x128xf32>
    tpu.vector_store %arg3[%c8, %c0_94], %188 {strides = array<i32>} : memref<16x128xf32, #tpu.memory_space<vmem>>, vector<8x128xf32>,
    return
  }
}

</mosaic_0001>

<bundles_post_ra>
// kernel: g_mapping_forward.1
= control target key start
LH: loop header
LB: loop body
LE: loop exit
PB: predicated region body
PF: predicated region fallthrough
CT: control target
= control target key end

     0   :  { %8 = vsyncpa [#allocation3], 0  ;;  %s2336_s0 = inlined_call_operand.hbm [shape: f32[16,128], index: 0, kind: input, shape index: {}]   ;;  %s2337_s1 = inlined_call_operand.hbm [shape: bf16[8,128,128], index: 1, kind: input, shape index: {}]   ;;  %s2338_s2 = inlined_call_operand.hbm [shape: f32[8,1,128], index: 2, kind: input, shape index: {}]   ;;  %s2339_s3 = inlined_call_operand.hbm [shape: f32[16,128], index: 3, kind: output, shape index: {}]  }
   0x1   :  { %9 = vsyncpa [#allocation6], 0 }
   0x2   :  { %10 = vsyncpa [#allocation4], 0  ;;  %s2090_s12 = smov [#allocation5]   ;;  %s1996_s16 = scalar_lea.hbm %s2337_s1, 8192 }
   0x3   :  { %s28_s13 = sshll.u32 %s2090_s12, 4  ;;  %p1997_p0 = scmp.ne.s32.totalorder %s2337_s1, %s1996_s16  ;;  %s29_s13 = int_to_ptr.vmem [resolvable:$true] %s28_s13 }
   0x4   :  { %p2000_p1 = scmp.lt.u32.totalorder %s1996_s16, %s2337_s1 }
   0x6   :  { %p2002_p2 = pnand %p2000_p1, %p1997_p0 }
   0x8   :  { %2005 = shalt.err (!%p2002_p2)
}
   0x9   :  { %s2006_s21 = scalar_lea.vmem %s29_s13, 8192  ;;  %p2011_p4 = scmp.lt.s32.totalorder %s29_s13, %s29_s13 }
   0xa   :  { %p2007_p3 = scmp.ne.s32.totalorder %s29_s13, %s2006_s21  ;;  %p2012_p5 = scmp.lt.s32.totalorder %s2006_s21, %s2006_s21 }
   0xc   :  { %p2013_p6 = por %p2012_p5, %p2011_p4 }
   0xe   :  { %p2014_p7 = pnand %p2013_p6, %p2007_p3 }
  0x10   :  { %2017 = shalt.err (!%p2014_p7)
}
  0x11   :  { %s2091_s22 = smov 64   ;;  %s2092_s23 = smov 4  }
  0x12   :  { %34 = dma.hbm_to_vmem [thread:$0]  %s2337_s1, 8192, %s29_s13, [#allocation6], %s2091_s22, %s2091_s22, %s2092_s23  }
  0x13   :  { %s2093_s26 = smov [#allocation2]   ;;  %s2018_s30 = scalar_lea.hbm %s2336_s0, 256 }
  0x14   :  { %s16_s27 = sshll.u32 %s2093_s26, 4  ;;  %p2019_p8 = scmp.ne.s32.totalorder %s2336_s0, %s2018_s30  ;;  %s17_s27 = int_to_ptr.vmem [resolvable:$true] %s16_s27 }
  0x15   :  { %p2022_p9 = scmp.lt.u32.totalorder %s2018_s30, %s2336_s0 }
  0x17   :  { %p2024_p10 = pnand %p2022_p9, %p2019_p8 }
  0x19   :  { %2027 = shalt.err (!%p2024_p10)
}
  0x1a   :  { %s2028_s8 = scalar_lea.vmem %s17_s27, 256  ;;  %p2033_p12 = scmp.lt.s32.totalorder %s17_s27, %s17_s27 }
  0x1b   :  { %p2029_p11 = scmp.ne.s32.totalorder %s17_s27, %s2028_s8  ;;  %p2034_p13 = scmp.lt.s32.totalorder %s2028_s8, %s2028_s8 }
  0x1d   :  { %p2035_p0 = por %p2034_p13, %p2033_p12 }
  0x1f   :  { %p2036_p1 = pnand %p2035_p0, %p2029_p11 }
  0x21   :  { %2039 = shalt.err (!%p2036_p1)
}
  0x22   :  { %s2094_s1 = smov 128   ;;  %s2095_s9 = smov 8  }
  0x23   :  { %22 = dma.hbm_to_vmem [thread:$0]  %s2336_s0, 256, %s17_s27, [#allocation3], %s2094_s1, %s2094_s1, %s2095_s9  }
  0x24   :  { %s2096_s12 = smov [#allocation7]   ;;  %s2040_s16 = scalar_lea.hbm %s2338_s2, 128 }
  0x25   :  { %s40_s13 = sshll.u32 %s2096_s12, 4  ;;  %p2041_p2 = scmp.ne.s32.totalorder %s2338_s2, %s2040_s16  ;;  %s41_s13 = int_to_ptr.vmem [resolvable:$true] %s40_s13 }
  0x26   :  { %p2044_p3 = scmp.lt.u32.totalorder %s2040_s16, %s2338_s2 }
  0x28   :  { %p2046_p4 = pnand %p2044_p3, %p2041_p2 }
  0x2a   :  { %2049 = shalt.err (!%p2046_p4)
}
  0x2b   :  { %s2050_s21 = scalar_lea.vmem %s41_s13, 128  ;;  %p2055_p6 = scmp.lt.s32.totalorder %s41_s13, %s41_s13 }
  0x2c   :  { %p2051_p5 = scmp.ne.s32.totalorder %s41_s13, %s2050_s21  ;;  %p2056_p7 = scmp.lt.s32.totalorder %s2050_s21, %s2050_s21 }
  0x2e   :  { %p2057_p8 = por %p2056_p7, %p2055_p6 }
  0x30   :  { %p2058_p9 = pnand %p2057_p8, %p2051_p5 }
  0x32   :  { %2061 = shalt.err (!%p2058_p9)
}
  0x33   :  { %s2097_s0 = smov 16   ;;  %s2098_s22 = smov 1  }
  0x34   :  { %46 = dma.hbm_to_vmem [thread:$0]  %s2338_s2, 128, %s41_s13, [#allocation6], %s2097_s0, %s2097_s0, %s2098_s22  }
  0x35   :  { %2084 = dma.done.wait [#allocation3], 256  }
  0x36   :  { %2085 = vsyncadd [#allocation3], 4294967040 }
  0x37   :  { %2086 = dma.done.wait [#allocation6], 8320  }
  0x38   :  { %2087 = vsyncadd [#allocation6], 4294958976  ;;  %v2099_v0 = vmov 0.0   ;;  %v57_v1 = vld [vmem:[#allocation2] sm:$0xff]  ;;  %v58_v2 = vld [vmem:[#allocation2 + $0x8] sm:$0xff]  ;;  %vm2100_vm0 = vmmov 0  }
  0x39   :  { %1596 = vmatprep.subr.bf16.mxu0 %v2099_v0  ;;  %1616 = vmatprep.subr.bf16.mxu1 %v2099_v0  ;;  %v59_v3 = vmul.f32 %v57_v1, %v57_v1  ;;  %v1928_v4 = vld [vmem:[#allocation5] sm:$0xff]   ;;  %v60_v5 = vmul.f32 %v58_v2, %v58_v2  ;;  %v1929_v6 = vld [vmem:[#allocation5 + $0x8] sm:$0xff]   ;;  %v1930_v7 = vld [vmem:[#allocation5 + $0x10] sm:$0xff]   ;;  %s2101_s2 = smov [#allocation8]  }
  0x3a   :  { %1597 = vmatpush3.bf16.msra.mxu0 %v1928_v4  ;;  %1617 = vmatpush3.bf16.msra.mxu1 %v1928_v4  ;;  %v1931_v8 = vld [vmem:[#allocation5 + $0x18] sm:$0xff]   ;;  %v1932_v9 = vld [vmem:[#allocation5 + $0x20] sm:$0xff]   ;;  %v1933_v10 = vld [vmem:[#allocation5 + $0x28] sm:$0xff]   ;;  %s1367_s25 = sshll.u32 %s2101_s2, 4  ;;  %s1368_s25 = int_to_ptr.vmem [resolvable:$true] %s1367_s25 }
  0x3b   :  { %61 = vadd.xlane.f32.xlu0 %v59_v3  ;;  %1598 = vmatprep.subr.bf16.mxu0 %v2099_v0  ;;  %v1934_v11 = vld [vmem:[#allocation5 + $0x30] sm:$0xff]   ;;  %v1935_v12 = vld [vmem:[#allocation5 + $0x38] sm:$0xff]   ;;  %v1936_v21 = vld [vmem:[#allocation5 + $0x40] sm:$0xff]   ;;  %s2062_s26 = scalar_lea.vmem %s1368_s25, 256  ;;  %p2067_p11 = scmp.lt.s32.totalorder %s1368_s25, %s1368_s25 }
  0x3c   :  { %1618 = vmatprep.subr.bf16.mxu1 %v2099_v0  ;;  %1612 = vmatprep.mubr.msk.bf16.mxu0 %vm2100_vm0, %v2099_v0  ;;  %v1937_v25 = vld [vmem:[#allocation5 + $0x48] sm:$0xff]   ;;  %v1938_v27 = vld [vmem:[#allocation5 + $0x50] sm:$0xff]   ;;  %v1939_v28 = vld [vmem:[#allocation5 + $0x58] sm:$0xff]   ;;  %p2063_p10 = scmp.ne.s32.totalorder %s1368_s25, %s2062_s26  ;;  %p2068_p12 = scmp.lt.s32.totalorder %s2062_s26, %s2062_s26 }
  0x3d   :  { %1632 = vmatprep.mubr.msk.bf16.mxu1 %vm2100_vm0, %v2099_v0  ;;  %v1940_v29 = vld [vmem:[#allocation5 + $0x60] sm:$0xff]   ;;  %v1941_v30 = vld [vmem:[#allocation5 + $0x68] sm:$0xff]   ;;  %v1942_v31 = vld [vmem:[#allocation5 + $0x70] sm:$0xff]  }
  0x3e   :  { %1599 = vmatpush3.bf16.msra.mxu0 %v1929_v6  ;;  %1619 = vmatpush3.bf16.msra.mxu1 %v1929_v6  ;;  %v1943_v32 = vld [vmem:[#allocation5 + $0x78] sm:$0xff]   ;;  %v1380_v33 = vld [vmem:[#allocation7] ss:$0 sm:$0xff]  ;;  %v1945_v50 = vld [vmem:[#allocation5 + $0x88] sm:$0xff]   ;;  %p2069_p13 = por %p2068_p12, %p2067_p11 }
  0x3f   :  { %63 = vadd.xlane.f32.xlu0 %v60_v5  ;;  %1600 = vmatprep.subr.bf16.mxu0 %v2099_v0  ;;  %v1944_v44 = vld [vmem:[#allocation5 + $0x80] sm:$0xff]   ;;  %v1946_v52 = vld [vmem:[#allocation5 + $0x90] sm:$0xff]   ;;  %v1947_v53 = vld [vmem:[#allocation5 + $0x98] sm:$0xff]  }
  0x40   :  { %1620 = vmatprep.subr.bf16.mxu1 %v2099_v0  ;;  %v1948_v54 = vld [vmem:[#allocation5 + $0xa0] sm:$0xff]   ;;  %v1949_v55 = vld [vmem:[#allocation5 + $0xa8] sm:$0xff]   ;;  %v1950_v56 = vld [vmem:[#allocation5 + $0xb0] sm:$0xff]   ;;  %p2070_p0 = pnand %p2069_p13, %p2063_p10 }
  0x41   :  { %v1951_v57 = vld [vmem:[#allocation5 + $0xb8] sm:$0xff]   ;;  %v1389_v58 = vld [vmem:[#allocation7 + $0x1] ss:$0 sm:$0xff] }
  0x42   :  { %1601 = vmatpush3.bf16.msra.mxu0 %v1930_v7  ;;  %1621 = vmatpush3.bf16.msra.mxu1 %v1930_v7  ;;  %v1952_v6 = vld [vmem:[#allocation5 + $0xc0] sm:$0xff]  }
  0x43   :  { %1602 = vmatprep.subr.bf16.mxu0 %v2099_v0  ;;  %1622 = vmatprep.subr.bf16.mxu1 %v2099_v0 }
  0x46   :  { %1603 = vmatpush3.bf16.msra.mxu0 %v1931_v8  ;;  %1623 = vmatpush3.bf16.msra.mxu1 %v1931_v8 }
  0x47   :  { %1604 = vmatprep.subr.bf16.mxu0 %v2099_v0  ;;  %1624 = vmatprep.subr.bf16.mxu1 %v2099_v0 }
  0x4a   :  { %1605 = vmatpush3.bf16.msra.mxu0 %v1932_v9  ;;  %1625 = vmatpush3.bf16.msra.mxu1 %v1932_v9 }
  0x4b   :  { %1606 = vmatprep.subr.bf16.mxu0 %v2099_v0  ;;  %1626 = vmatprep.subr.bf16.mxu1 %v2099_v0 }
  0x4e   :  { %1607 = vmatpush3.bf16.msra.mxu0 %v1933_v10  ;;  %1627 = vmatpush3.bf16.msra.mxu1 %v1933_v10 }
  0x4f   :  { %1608 = vmatprep.subr.bf16.mxu0 %v2099_v0  ;;  %1628 = vmatprep.subr.bf16.mxu1 %v2099_v0 }
  0x52   :  { %1609 = vmatpush3.bf16.msra.mxu0 %v1934_v11  ;;  %1629 = vmatpush3.bf16.msra.mxu1 %v1934_v11 }
  0x53   :  { %1610 = vmatprep.subr.bf16.mxu0 %v2099_v0  ;;  %1630 = vmatprep.subr.bf16.mxu1 %v2099_v0 }
  0x56   :  { %1611 = vmatpush3.bf16.msra.mxu0 %v1935_v12  ;;  %1631 = vmatpush3.bf16.msra.mxu1 %v1935_v12  ;;  %v1953_v12 = vld [vmem:[#allocation5 + $0xc8] sm:$0xff]  }
  0x57   :  { %1636 = vmatprep.subr.bf16.mxu0 %v2099_v0  ;;  %1656 = vmatprep.subr.bf16.mxu1 %v2099_v0 }
  0xc8   :  { %v62_v13 = vpop.xlane.xlu0 %61 }
  0xc9   :  { %v66_v14 = vmul.f32 0.0078125, %v62_v13 }
  0xcb   :  { %v68_v15 = vadd.f32 1e-08, %v66_v14  ;;  %v1954_v14 = vld [vmem:[#allocation5 + $0xd0] sm:$0xff]  }
  0xcc   :  { %v64_v16 = vpop.xlane.xlu0 %63 }
  0xcd   :  { %1992 = vrsqrt.f32 %v68_v15  ;;  %v67_v17 = vmul.f32 0.0078125, %v64_v16  ;;  %v1955_v15 = vld [vmem:[#allocation5 + $0xd8] sm:$0xff]   ;;  %v1956_v16 = vld [vmem:[#allocation5 + $0xe0] sm:$0xff]  }
  0xcf   :  { %v69_v18 = vadd.f32 1e-08, %v67_v17  ;;  %v1957_v17 = vld [vmem:[#allocation5 + $0xe8] sm:$0xff]  }
  0xd1   :  { %1994 = vrsqrt.f32 %v69_v18  ;;  %v1958_v18 = vld [vmem:[#allocation5 + $0xf0] sm:$0xff]  }
  0xd7   :  { %v1993_v19 = vpop.eup %1992 }
  0xd8   :  { %v72_v20 = vmul.f32 %v1993_v19, %v57_v1  ;;  %v1959_v19 = vld [vmem:[#allocation5 + $0xf8] sm:$0xff]  }
  0xda   :  { %v91_v22 = vpack.c.bf16 %v72_v20, %v72_v20  ;;  %v1398_v20 = vld [vmem:[#allocation7 + $0x2] ss:$0 sm:$0xff] }
  0xdb   :  { %v1995_v23 = vpop.eup %1994 }
  0xdc   :  { %1613 = vmatmul.mubr.bf16.vlgmr.msra.gmra.mrb[0].mxu0 %v91_v22  ;;  %v73_v24 = vmul.f32 %v1995_v23, %v58_v2 }
  0xdd   :  { %1637 = vmatpush3.bf16.msra.mxu0 %v1936_v21  ;;  %1652 = vmatprep.mubr.msk.bf16.mxu0 %vm2100_vm0, %v2099_v0 }
  0xde   :  { %v186_v26 = vpack.c.bf16 %v73_v24, %v73_v24  ;;  %1638 = vmatprep.subr.bf16.mxu0 %v2099_v0 }
  0xe0   :  { %1633 = vmatmul.mubr.bf16.vlgmr.msra.gmra.mrb[0].mxu1 %v186_v26 }
  0xe1   :  { %1639 = vmatpush3.bf16.msra.mxu0 %v1937_v25  ;;  %1657 = vmatpush3.bf16.msra.mxu1 %v1936_v21 }
  0xe2   :  { %1640 = vmatprep.subr.bf16.mxu0 %v2099_v0  ;;  %1658 = vmatprep.subr.bf16.mxu1 %v2099_v0 }
  0xe3   :  { %1672 = vmatprep.mubr.msk.bf16.mxu1 %vm2100_vm0, %v2099_v0 }
  0xe5   :  { %1641 = vmatpush3.bf16.msra.mxu0 %v1938_v27  ;;  %1659 = vmatpush3.bf16.msra.mxu1 %v1937_v25 }
  0xe6   :  { %1642 = vmatprep.subr.bf16.mxu0 %v2099_v0  ;;  %1660 = vmatprep.subr.bf16.mxu1 %v2099_v0 }
  0xe9   :  { %1643 = vmatpush3.bf16.msra.mxu0 %v1939_v28  ;;  %1661 = vmatpush3.bf16.msra.mxu1 %v1938_v27 }
  0xea   :  { %1644 = vmatprep.subr.bf16.mxu0 %v2099_v0  ;;  %1662 = vmatprep.subr.bf16.mxu1 %v2099_v0 }
  0xed   :  { %1645 = vmatpush3.bf16.msra.mxu0 %v1940_v29  ;;  %1663 = vmatpush3.bf16.msra.mxu1 %v1939_v28 }
  0xee   :  { %1646 = vmatprep.subr.bf16.mxu0 %v2099_v0  ;;  %1664 = vmatprep.subr.bf16.mxu1 %v2099_v0 }
  0xf1   :  { %1647 = vmatpush3.bf16.msra.mxu0 %v1941_v30  ;;  %1665 = vmatpush3.bf16.msra.mxu1 %v1940_v29 }
  0xf2   :  { %1648 = vmatprep.subr.bf16.mxu0 %v2099_v0  ;;  %1666 = vmatprep.subr.bf16.mxu1 %v2099_v0 }
  0xf5   :  { %1667 = vmatpush3.bf16.msra.mxu1 %v1941_v30  ;;  %1649 = vmatpush3.bf16.msra.mxu0 %v1942_v31 }
  0xf6   :  { %1668 = vmatprep.subr.bf16.mxu1 %v2099_v0  ;;  %1650 = vmatprep.subr.bf16.mxu0 %v2099_v0 }
  0xf9   :  { %1669 = vmatpush3.bf16.msra.mxu1 %v1942_v31  ;;  %1651 = vmatpush3.bf16.msra.mxu0 %v1943_v32  ;;  %v1960_v31 = vld [vmem:[#allocation5 + $0x100] sm:$0xff]  }
  0xfa   :  { %1670 = vmatprep.subr.bf16.mxu1 %v2099_v0  ;;  %1676 = vmatprep.subr.bf16.mxu0 %v2099_v0 }
  0xfd   :  { %1671 = vmatpush3.bf16.msra.mxu1 %v1943_v32 }
  0xfe   :  { %1696 = vmatprep.subr.bf16.mxu1 %v2099_v0 }
 0x1af   :  { %v180_v34 = vpop.f32.mrb[0].mxu0 }
 0x1b0   :  { %v181_v35 = vadd.f32 %v1380_v33, %v180_v34  ;;  %v1614_v36 = vpop.f32.mrb[1].mxu0 }
 0x1b1   :  { %v183_v37 = vpop.f32.mrb[2].mxu0 }
 0x1b2   :  { %vm227_vm1 = vcmp.ge.f32.partialorder %v181_v35, 0.0  ;;  %v228_v38 = vmul.f32 0.2, %v181_v35  ;;  %v1615_v39 = vpop.f32.mrb[3].mxu0  ;;  %v1961_v37 = vld [vmem:[#allocation5 + $0x108] sm:$0xff]  }
 0x1b3   :  { %v221_v40 = vpop.f32.mrb[0].mxu1  ;;  %v1962_v39 = vld [vmem:[#allocation5 + $0x110] sm:$0xff]  }
 0x1b4   :  { %v229_v41 = vsel %vm227_vm1, %v181_v35, %v228_v38  ;;  %v222_v42 = vadd.f32 %v1380_v33, %v221_v40  ;;  %v1634_v43 = vpop.f32.mrb[1].mxu1  ;;  %v1963_v40 = vld [vmem:[#allocation5 + $0x118] sm:$0xff]  }
 0x1b5   :  { %v252_v45 = vpack.c.bf16 %v229_v41, %v229_v41  ;;  %v224_v46 = vpop.f32.mrb[2].mxu1  ;;  %v1964_v41 = vld [vmem:[#allocation5 + $0x120] sm:$0xff]   ;;  %v1966_v43 = vld [vmem:[#allocation5 + $0x130] sm:$0xff]  }
 0x1b6   :  { %vm230_vm2 = vcmp.ge.f32.partialorder %v222_v42, 0.0  ;;  %v231_v47 = vmul.f32 0.2, %v222_v42  ;;  %v1635_v48 = vpop.f32.mrb[3].mxu1 }
 0x1b7   :  { %1653 = vmatmul.mubr.bf16.vlgmr.msra.gmra.mrb[4].mxu0 %v252_v45  ;;  %v1407_v45 = vld [vmem:[#allocation7 + $0x3] ss:$0 sm:$0xff] }
 0x1b8   :  { %v232_v49 = vsel %vm230_vm2, %v222_v42, %v231_v47  ;;  %1677 = vmatpush3.bf16.msra.mxu0 %v1944_v44  ;;  %1692 = vmatprep.mubr.msk.bf16.mxu0 %vm2100_vm0, %v2099_v0  ;;  %v1965_v42 = vld [vmem:[#allocation5 + $0x128] sm:$0xff]  }
 0x1b9   :  { %v347_v51 = vpack.c.bf16 %v232_v49, %v232_v49  ;;  %1678 = vmatprep.subr.bf16.mxu0 %v2099_v0 }
 0x1bb   :  { %1673 = vmatmul.mubr.bf16.vlgmr.msra.gmra.mrb[4].mxu1 %v347_v51 }
 0x1bc   :  { %1679 = vmatpush3.bf16.msra.mxu0 %v1945_v50  ;;  %1697 = vmatpush3.bf16.msra.mxu1 %v1944_v44  ;;  %v1967_v44 = vld [vmem:[#allocation5 + $0x138] sm:$0xff]  }
 0x1bd   :  { %1680 = vmatprep.subr.bf16.mxu0 %v2099_v0  ;;  %1698 = vmatprep.subr.bf16.mxu1 %v2099_v0 }
 0x1be   :  { %1712 = vmatprep.mubr.msk.bf16.mxu1 %vm2100_vm0, %v2099_v0 }
 0x1c0   :  { %1681 = vmatpush3.bf16.msra.mxu0 %v1946_v52  ;;  %1699 = vmatpush3.bf16.msra.mxu1 %v1945_v50 }
 0x1c1   :  { %1682 = vmatprep.subr.bf16.mxu0 %v2099_v0  ;;  %1700 = vmatprep.subr.bf16.mxu1 %v2099_v0 }
 0x1c4   :  { %1683 = vmatpush3.bf16.msra.mxu0 %v1947_v53  ;;  %1701 = vmatpush3.bf16.msra.mxu1 %v1946_v52 }
 0x1c5   :  { %1684 = vmatprep.subr.bf16.mxu0 %v2099_v0  ;;  %1702 = vmatprep.subr.bf16.mxu1 %v2099_v0 }
 0x1c8   :  { %1685 = vmatpush3.bf16.msra.mxu0 %v1948_v54  ;;  %1703 = vmatpush3.bf16.msra.mxu1 %v1947_v53 }
 0x1c9   :  { %1686 = vmatprep.subr.bf16.mxu0 %v2099_v0  ;;  %1704 = vmatprep.subr.bf16.mxu1 %v2099_v0 }
 0x1cc   :  { %1687 = vmatpush3.bf16.msra.mxu0 %v1949_v55  ;;  %1705 = vmatpush3.bf16.msra.mxu1 %v1948_v54 }
 0x1cd   :  { %1688 = vmatprep.subr.bf16.mxu0 %v2099_v0  ;;  %1706 = vmatprep.subr.bf16.mxu1 %v2099_v0 }
 0x1d0   :  { %1707 = vmatpush3.bf16.msra.mxu1 %v1949_v55  ;;  %1689 = vmatpush3.bf16.msra.mxu0 %v1950_v56 }
 0x1d1   :  { %1708 = vmatprep.subr.bf16.mxu1 %v2099_v0  ;;  %1690 = vmatprep.subr.bf16.mxu0 %v2099_v0 }
 0x1d4   :  { %1709 = vmatpush3.bf16.msra.mxu1 %v1950_v56  ;;  %1691 = vmatpush3.bf16.msra.mxu0 %v1951_v57  ;;  %v1968_v56 = vld [vmem:[#allocation5 + $0x140] sm:$0xff]  }
 0x1d5   :  { %1710 = vmatprep.subr.bf16.mxu1 %v2099_v0  ;;  %1716 = vmatprep.subr.bf16.mxu0 %v2099_v0 }
 0x1d8   :  { %1711 = vmatpush3.bf16.msra.mxu1 %v1951_v57 }
 0x1d9   :  { %1736 = vmatprep.subr.bf16.mxu1 %v2099_v0 }
 0x28a   :  { %v341_v59 = vpop.f32.mrb[4].mxu0 }
 0x28b   :  { %v342_v60 = vadd.f32 %v1389_v58, %v341_v59  ;;  %v1654_v61 = vpop.f32.mrb[5].mxu0 }
 0x28c   :  { %v344_v62 = vpop.f32.mrb[6].mxu0 }
 0x28d   :  { %vm388_vm3 = vcmp.ge.f32.partialorder %v342_v60, 0.0  ;;  %v389_v63 = vmul.f32 0.2, %v342_v60  ;;  %v1655_v1 = vpop.f32.mrb[7].mxu0  ;;  %v1969_v62 = vld [vmem:[#allocation5 + $0x148] sm:$0xff]  }
 0x28e   :  { %v382_v2 = vpop.f32.mrb[4].mxu1  ;;  %v1970_v1 = vld [vmem:[#allocation5 + $0x150] sm:$0xff]  }
 0x28f   :  { %v390_v3 = vsel %vm388_vm3, %v342_v60, %v389_v63  ;;  %v383_v4 = vadd.f32 %v1389_v58, %v382_v2  ;;  %v1674_v5 = vpop.f32.mrb[5].mxu1  ;;  %v1971_v2 = vld [vmem:[#allocation5 + $0x158] sm:$0xff]  }
 0x290   :  { %v413_v7 = vpack.c.bf16 %v390_v3, %v390_v3  ;;  %v385_v8 = vpop.f32.mrb[6].mxu1  ;;  %v1972_v3 = vld [vmem:[#allocation5 + $0x160] sm:$0xff]   ;;  %v1974_v5 = vld [vmem:[#allocation5 + $0x170] sm:$0xff]  }
 0x291   :  { %vm391_vm4 = vcmp.ge.f32.partialorder %v383_v4, 0.0  ;;  %v392_v9 = vmul.f32 0.2, %v383_v4  ;;  %v1675_v10 = vpop.f32.mrb[7].mxu1 }
 0x292   :  { %1693 = vmatmul.mubr.bf16.vlgmr.msra.gmra.mrb[8].mxu0 %v413_v7  ;;  %v1416_v7 = vld [vmem:[#allocation7 + $0x4] ss:$0 sm:$0xff] }
 0x293   :  { %v393_v11 = vsel %vm391_vm4, %v383_v4, %v392_v9  ;;  %1717 = vmatpush3.bf16.msra.mxu0 %v1952_v6  ;;  %1732 = vmatprep.mubr.msk.bf16.mxu0 %vm2100_vm0, %v2099_v0  ;;  %v1973_v4 = vld [vmem:[#allocation5 + $0x168] sm:$0xff]  }
 0x294   :  { %v508_v13 = vpack.c.bf16 %v393_v11, %v393_v11  ;;  %1718 = vmatprep.subr.bf16.mxu0 %v2099_v0 }
 0x296   :  { %1713 = vmatmul.mubr.bf16.vlgmr.msra.gmra.mrb[8].mxu1 %v508_v13 }
 0x297   :  { %1719 = vmatpush3.bf16.msra.mxu0 %v1953_v12  ;;  %1737 = vmatpush3.bf16.msra.mxu1 %v1952_v6  ;;  %v1975_v6 = vld [vmem:[#allocation5 + $0x178] sm:$0xff]  }
 0x298   :  { %1720 = vmatprep.subr.bf16.mxu0 %v2099_v0  ;;  %1738 = vmatprep.subr.bf16.mxu1 %v2099_v0 }
 0x299   :  { %1752 = vmatprep.mubr.msk.bf16.mxu1 %vm2100_vm0, %v2099_v0 }
 0x29b   :  { %1721 = vmatpush3.bf16.msra.mxu0 %v1954_v14  ;;  %1739 = vmatpush3.bf16.msra.mxu1 %v1953_v12 }
 0x29c   :  { %1722 = vmatprep.subr.bf16.mxu0 %v2099_v0  ;;  %1740 = vmatprep.subr.bf16.mxu1 %v2099_v0 }
 0x29f   :  { %1723 = vmatpush3.bf16.msra.mxu0 %v1955_v15  ;;  %1741 = vmatpush3.bf16.msra.mxu1 %v1954_v14 }
 0x2a0   :  { %1724 = vmatprep.subr.bf16.mxu0 %v2099_v0  ;;  %1742 = vmatprep.subr.bf16.mxu1 %v2099_v0 }
 0x2a3   :  { %1725 = vmatpush3.bf16.msra.mxu0 %v1956_v16  ;;  %1743 = vmatpush3.bf16.msra.mxu1 %v1955_v15 }
 0x2a4   :  { %1726 = vmatprep.subr.bf16.mxu0 %v2099_v0  ;;  %1744 = vmatprep.subr.bf16.mxu1 %v2099_v0 }
 0x2a7   :  { %1727 = vmatpush3.bf16.msra.mxu0 %v1957_v17  ;;  %1745 = vmatpush3.bf16.msra.mxu1 %v1956_v16 }
 0x2a8   :  { %1728 = vmatprep.subr.bf16.mxu0 %v2099_v0  ;;  %1746 = vmatprep.subr.bf16.mxu1 %v2099_v0 }
 0x2ab   :  { %1747 = vmatpush3.bf16.msra.mxu1 %v1957_v17  ;;  %1729 = vmatpush3.bf16.msra.mxu0 %v1958_v18 }
 0x2ac   :  { %1748 = vmatprep.subr.bf16.mxu1 %v2099_v0  ;;  %1730 = vmatprep.subr.bf16.mxu0 %v2099_v0 }
 0x2af   :  { %1749 = vmatpush3.bf16.msra.mxu1 %v1958_v18  ;;  %1731 = vmatpush3.bf16.msra.mxu0 %v1959_v19  ;;  %v1976_v18 = vld [vmem:[#allocation5 + $0x180] sm:$0xff]  }
 0x2b0   :  { %1750 = vmatprep.subr.bf16.mxu1 %v2099_v0  ;;  %1756 = vmatprep.subr.bf16.mxu0 %v2099_v0 }
 0x2b3   :  { %1751 = vmatpush3.bf16.msra.mxu1 %v1959_v19 }
 0x2b4   :  { %1776 = vmatprep.subr.bf16.mxu1 %v2099_v0 }
 0x365   :  { %v502_v21 = vpop.f32.mrb[8].mxu0 }
 0x366   :  { %v503_v22 = vadd.f32 %v1398_v20, %v502_v21  ;;  %v1694_v23 = vpop.f32.mrb[9].mxu0 }
 0x367   :  { %v505_v24 = vpop.f32.mrb[10].mxu0 }
 0x368   :  { %vm549_vm5 = vcmp.ge.f32.partialorder %v503_v22, 0.0  ;;  %v550_v25 = vmul.f32 0.2, %v503_v22  ;;  %v1695_v26 = vpop.f32.mrb[11].mxu0  ;;  %v1977_v24 = vld [vmem:[#allocation5 + $0x188] sm:$0xff]  }
 0x369   :  { %v543_v27 = vpop.f32.mrb[8].mxu1  ;;  %v1978_v26 = vld [vmem:[#allocation5 + $0x190] sm:$0xff]  }
 0x36a   :  { %v551_v28 = vsel %vm549_vm5, %v503_v22, %v550_v25  ;;  %v544_v29 = vadd.f32 %v1398_v20, %v543_v27  ;;  %v1714_v30 = vpop.f32.mrb[9].mxu1  ;;  %v1979_v27 = vld [vmem:[#allocation5 + $0x198] sm:$0xff]  }
 0x36b   :  { %v574_v32 = vpack.c.bf16 %v551_v28, %v551_v28  ;;  %v546_v33 = vpop.f32.mrb[10].mxu1  ;;  %v1980_v28 = vld [vmem:[#allocation5 + $0x1a0] sm:$0xff]   ;;  %v1982_v30 = vld [vmem:[#allocation5 + $0x1b0] sm:$0xff]  }
 0x36c   :  { %vm552_vm6 = vcmp.ge.f32.partialorder %v544_v29, 0.0  ;;  %v553_v34 = vmul.f32 0.2, %v544_v29  ;;  %v1715_v35 = vpop.f32.mrb[11].mxu1 }
 0x36d   :  { %1733 = vmatmul.mubr.bf16.vlgmr.msra.gmra.mrb[12].mxu0 %v574_v32  ;;  %v1425_v32 = vld [vmem:[#allocation7 + $0x5] ss:$0 sm:$0xff] }
 0x36e   :  { %v554_v36 = vsel %vm552_vm6, %v544_v29, %v553_v34  ;;  %1757 = vmatpush3.bf16.msra.mxu0 %v1960_v31  ;;  %1772 = vmatprep.mubr.msk.bf16.mxu0 %vm2100_vm0, %v2099_v0  ;;  %v1981_v29 = vld [vmem:[#allocation5 + $0x1a8] sm:$0xff]  }
 0x36f   :  { %v669_v38 = vpack.c.bf16 %v554_v36, %v554_v36  ;;  %1758 = vmatprep.subr.bf16.mxu0 %v2099_v0 }
 0x371   :  { %1753 = vmatmul.mubr.bf16.vlgmr.msra.gmra.mrb[12].mxu1 %v669_v38 }
 0x372   :  { %1759 = vmatpush3.bf16.msra.mxu0 %v1961_v37  ;;  %1777 = vmatpush3.bf16.msra.mxu1 %v1960_v31  ;;  %v1983_v31 = vld [vmem:[#allocation5 + $0x1b8] sm:$0xff]  }
 0x373   :  { %1760 = vmatprep.subr.bf16.mxu0 %v2099_v0  ;;  %1778 = vmatprep.subr.bf16.mxu1 %v2099_v0 }
 0x374   :  { %1792 = vmatprep.mubr.msk.bf16.mxu1 %vm2100_vm0, %v2099_v0 }
 0x376   :  { %1761 = vmatpush3.bf16.msra.mxu0 %v1962_v39  ;;  %1779 = vmatpush3.bf16.msra.mxu1 %v1961_v37 }
 0x377   :  { %1762 = vmatprep.subr.bf16.mxu0 %v2099_v0  ;;  %1780 = vmatprep.subr.bf16.mxu1 %v2099_v0 }
 0x37a   :  { %1763 = vmatpush3.bf16.msra.mxu0 %v1963_v40  ;;  %1781 = vmatpush3.bf16.msra.mxu1 %v1962_v39 }
 0x37b   :  { %1764 = vmatprep.subr.bf16.mxu0 %v2099_v0  ;;  %1782 = vmatprep.subr.bf16.mxu1 %v2099_v0 }
 0x37e   :  { %1765 = vmatpush3.bf16.msra.mxu0 %v1964_v41  ;;  %1783 = vmatpush3.bf16.msra.mxu1 %v1963_v40 }
 0x37f   :  { %1766 = vmatprep.subr.bf16.mxu0 %v2099_v0  ;;  %1784 = vmatprep.subr.bf16.mxu1 %v2099_v0 }
 0x382   :  { %1767 = vmatpush3.bf16.msra.mxu0 %v1965_v42  ;;  %1785 = vmatpush3.bf16.msra.mxu1 %v1964_v41 }
 0x383   :  { %1768 = vmatprep.subr.bf16.mxu0 %v2099_v0  ;;  %1786 = vmatprep.subr.bf16.mxu1 %v2099_v0 }
 0x386   :  { %1787 = vmatpush3.bf16.msra.mxu1 %v1965_v42  ;;  %1769 = vmatpush3.bf16.msra.mxu0 %v1966_v43 }
 0x387   :  { %1788 = vmatprep.subr.bf16.mxu1 %v2099_v0  ;;  %1770 = vmatprep.subr.bf16.mxu0 %v2099_v0 }
 0x38a   :  { %1789 = vmatpush3.bf16.msra.mxu1 %v1966_v43  ;;  %1771 = vmatpush3.bf16.msra.mxu0 %v1967_v44  ;;  %v1984_v43 = vld [vmem:[#allocation5 + $0x1c0] sm:$0xff]  }
 0x38b   :  { %1790 = vmatprep.subr.bf16.mxu1 %v2099_v0  ;;  %1796 = vmatprep.subr.bf16.mxu0 %v2099_v0 }
 0x38e   :  { %1791 = vmatpush3.bf16.msra.mxu1 %v1967_v44 }
 0x38f   :  { %1816 = vmatprep.subr.bf16.mxu1 %v2099_v0 }
 0x440   :  { %v663_v46 = vpop.f32.mrb[12].mxu0 }
 0x441   :  { %v664_v47 = vadd.f32 %v1407_v45, %v663_v46  ;;  %v1734_v48 = vpop.f32.mrb[13].mxu0 }
 0x442   :  { %v666_v49 = vpop.f32.mrb[14].mxu0 }
 0x443   :  { %vm710_vm7 = vcmp.ge.f32.partialorder %v664_v47, 0.0  ;;  %v711_v50 = vmul.f32 0.2, %v664_v47  ;;  %v1735_v51 = vpop.f32.mrb[15].mxu0  ;;  %v1985_v49 = vld [vmem:[#allocation5 + $0x1c8] sm:$0xff]  }
 0x444   :  { %v704_v52 = vpop.f32.mrb[12].mxu1  ;;  %v1986_v51 = vld [vmem:[#allocation5 + $0x1d0] sm:$0xff]  }
 0x445   :  { %v712_v53 = vsel %vm710_vm7, %v664_v47, %v711_v50  ;;  %v705_v54 = vadd.f32 %v1407_v45, %v704_v52  ;;  %v1754_v55 = vpop.f32.mrb[13].mxu1  ;;  %v1987_v52 = vld [vmem:[#allocation5 + $0x1d8] sm:$0xff]  }
 0x446   :  { %v735_v57 = vpack.c.bf16 %v712_v53, %v712_v53  ;;  %v707_v58 = vpop.f32.mrb[14].mxu1  ;;  %v1988_v53 = vld [vmem:[#allocation5 + $0x1e0] sm:$0xff]   ;;  %v1990_v55 = vld [vmem:[#allocation5 + $0x1f0] sm:$0xff]  }
 0x447   :  { %vm713_vm8 = vcmp.ge.f32.partialorder %v705_v54, 0.0  ;;  %v714_v59 = vmul.f32 0.2, %v705_v54  ;;  %v1755_v60 = vpop.f32.mrb[15].mxu1 }
 0x448   :  { %1773 = vmatmul.mubr.bf16.vlgmr.msra.gmra.mrb[16].mxu0 %v735_v57  ;;  %v1434_v57 = vld [vmem:[#allocation7 + $0x6] ss:$0 sm:$0xff] }
 0x449   :  { %v715_v61 = vsel %vm713_vm8, %v705_v54, %v714_v59  ;;  %1797 = vmatpush3.bf16.msra.mxu0 %v1968_v56  ;;  %1812 = vmatprep.mubr.msk.bf16.mxu0 %vm2100_vm0, %v2099_v0  ;;  %v1989_v54 = vld [vmem:[#allocation5 + $0x1e8] sm:$0xff]  }
 0x44a   :  { %v830_v63 = vpack.c.bf16 %v715_v61, %v715_v61  ;;  %1798 = vmatprep.subr.bf16.mxu0 %v2099_v0 }
 0x44c   :  { %1793 = vmatmul.mubr.bf16.vlgmr.msra.gmra.mrb[16].mxu1 %v830_v63 }
 0x44d   :  { %1799 = vmatpush3.bf16.msra.mxu0 %v1969_v62  ;;  %1817 = vmatpush3.bf16.msra.mxu1 %v1968_v56  ;;  %v1991_v56 = vld [vmem:[#allocation5 + $0x1f8] sm:$0xff]  }
 0x44e   :  { %1800 = vmatprep.subr.bf16.mxu0 %v2099_v0  ;;  %1818 = vmatprep.subr.bf16.mxu1 %v2099_v0 }
 0x44f   :  { %1832 = vmatprep.mubr.msk.bf16.mxu1 %vm2100_vm0, %v2099_v0 }
 0x451   :  { %1801 = vmatpush3.bf16.msra.mxu0 %v1970_v1  ;;  %1819 = vmatpush3.bf16.msra.mxu1 %v1969_v62 }
 0x452   :  { %1802 = vmatprep.subr.bf16.mxu0 %v2099_v0  ;;  %1820 = vmatprep.subr.bf16.mxu1 %v2099_v0 }
 0x455   :  { %1803 = vmatpush3.bf16.msra.mxu0 %v1971_v2  ;;  %1821 = vmatpush3.bf16.msra.mxu1 %v1970_v1 }
 0x456   :  { %1804 = vmatprep.subr.bf16.mxu0 %v2099_v0  ;;  %1822 = vmatprep.subr.bf16.mxu1 %v2099_v0 }
 0x459   :  { %1805 = vmatpush3.bf16.msra.mxu0 %v1972_v3  ;;  %1823 = vmatpush3.bf16.msra.mxu1 %v1971_v2 }
 0x45a   :  { %1806 = vmatprep.subr.bf16.mxu0 %v2099_v0  ;;  %1824 = vmatprep.subr.bf16.mxu1 %v2099_v0 }
 0x45d   :  { %1807 = vmatpush3.bf16.msra.mxu0 %v1973_v4  ;;  %1825 = vmatpush3.bf16.msra.mxu1 %v1972_v3 }
 0x45e   :  { %1808 = vmatprep.subr.bf16.mxu0 %v2099_v0  ;;  %1826 = vmatprep.subr.bf16.mxu1 %v2099_v0 }
 0x461   :  { %1827 = vmatpush3.bf16.msra.mxu1 %v1973_v4  ;;  %1809 = vmatpush3.bf16.msra.mxu0 %v1974_v5 }
 0x462   :  { %1828 = vmatprep.subr.bf16.mxu1 %v2099_v0  ;;  %1810 = vmatprep.subr.bf16.mxu0 %v2099_v0 }
 0x465   :  { %1829 = vmatpush3.bf16.msra.mxu1 %v1974_v5  ;;  %1811 = vmatpush3.bf16.msra.mxu0 %v1975_v6 }
 0x466   :  { %1830 = vmatprep.subr.bf16.mxu1 %v2099_v0  ;;  %1836 = vmatprep.subr.bf16.mxu0 %v2099_v0 }
 0x469   :  { %1831 = vmatpush3.bf16.msra.mxu1 %v1975_v6 }
 0x46a   :  { %1856 = vmatprep.subr.bf16.mxu1 %v2099_v0 }
 0x51b   :  { %v824_v8 = vpop.f32.mrb[16].mxu0 }
 0x51c   :  { %v825_v9 = vadd.f32 %v1416_v7, %v824_v8  ;;  %v1774_v10 = vpop.f32.mrb[17].mxu0 }
 0x51d   :  { %v827_v11 = vpop.f32.mrb[18].mxu0  ;;  %v1443_v10 = vld [vmem:[#allocation7 + $0x7] ss:$0 sm:$0xff] }
 0x51e   :  { %vm871_vm9 = vcmp.ge.f32.partialorder %v825_v9, 0.0  ;;  %v872_v12 = vmul.f32 0.2, %v825_v9  ;;  %v1775_v13 = vpop.f32.mrb[19].mxu0 }
 0x51f   :  { %v865_v14 = vpop.f32.mrb[16].mxu1 }
 0x520   :  { %v873_v15 = vsel %vm871_vm9, %v825_v9, %v872_v12  ;;  %v866_v16 = vadd.f32 %v1416_v7, %v865_v14  ;;  %v1794_v17 = vpop.f32.mrb[17].mxu1 }
 0x521   :  { %v896_v19 = vpack.c.bf16 %v873_v15, %v873_v15  ;;  %v868_v20 = vpop.f32.mrb[18].mxu1 }
 0x522   :  { %vm874_vm10 = vcmp.ge.f32.partialorder %v866_v16, 0.0  ;;  %v875_v21 = vmul.f32 0.2, %v866_v16  ;;  %v1795_v22 = vpop.f32.mrb[19].mxu1 }
 0x523   :  { %1813 = vmatmul.mubr.bf16.vlgmr.msra.gmra.mrb[20].mxu0 %v896_v19 }
 0x524   :  { %v876_v23 = vsel %vm874_vm10, %v866_v16, %v875_v21  ;;  %1837 = vmatpush3.bf16.msra.mxu0 %v1976_v18  ;;  %1852 = vmatprep.mubr.msk.bf16.mxu0 %vm2100_vm0, %v2099_v0 }
 0x525   :  { %v991_v25 = vpack.c.bf16 %v876_v23, %v876_v23  ;;  %1838 = vmatprep.subr.bf16.mxu0 %v2099_v0 }
 0x527   :  { %1833 = vmatmul.mubr.bf16.vlgmr.msra.gmra.mrb[20].mxu1 %v991_v25 }
 0x528   :  { %1839 = vmatpush3.bf16.msra.mxu0 %v1977_v24  ;;  %1857 = vmatpush3.bf16.msra.mxu1 %v1976_v18 }
 0x529   :  { %1840 = vmatprep.subr.bf16.mxu0 %v2099_v0  ;;  %1858 = vmatprep.subr.bf16.mxu1 %v2099_v0 }
 0x52a   :  { %1872 = vmatprep.mubr.msk.bf16.mxu1 %vm2100_vm0, %v2099_v0 }
 0x52c   :  { %1841 = vmatpush3.bf16.msra.mxu0 %v1978_v26  ;;  %1859 = vmatpush3.bf16.msra.mxu1 %v1977_v24 }
 0x52d   :  { %1842 = vmatprep.subr.bf16.mxu0 %v2099_v0  ;;  %1860 = vmatprep.subr.bf16.mxu1 %v2099_v0 }
 0x530   :  { %1843 = vmatpush3.bf16.msra.mxu0 %v1979_v27  ;;  %1861 = vmatpush3.bf16.msra.mxu1 %v1978_v26 }
 0x531   :  { %1844 = vmatprep.subr.bf16.mxu0 %v2099_v0  ;;  %1862 = vmatprep.subr.bf16.mxu1 %v2099_v0 }
 0x534   :  { %1845 = vmatpush3.bf16.msra.mxu0 %v1980_v28  ;;  %1863 = vmatpush3.bf16.msra.mxu1 %v1979_v27 }
 0x535   :  { %1846 = vmatprep.subr.bf16.mxu0 %v2099_v0  ;;  %1864 = vmatprep.subr.bf16.mxu1 %v2099_v0 }
 0x538   :  { %1847 = vmatpush3.bf16.msra.mxu0 %v1981_v29  ;;  %1865 = vmatpush3.bf16.msra.mxu1 %v1980_v28 }
 0x539   :  { %1848 = vmatprep.subr.bf16.mxu0 %v2099_v0  ;;  %1866 = vmatprep.subr.bf16.mxu1 %v2099_v0 }
 0x53c   :  { %1867 = vmatpush3.bf16.msra.mxu1 %v1981_v29  ;;  %1849 = vmatpush3.bf16.msra.mxu0 %v1982_v30 }
 0x53d   :  { %1868 = vmatprep.subr.bf16.mxu1 %v2099_v0  ;;  %1850 = vmatprep.subr.bf16.mxu0 %v2099_v0 }
 0x540   :  { %1869 = vmatpush3.bf16.msra.mxu1 %v1982_v30  ;;  %1851 = vmatpush3.bf16.msra.mxu0 %v1983_v31 }
 0x541   :  { %1870 = vmatprep.subr.bf16.mxu1 %v2099_v0  ;;  %1876 = vmatprep.subr.bf16.mxu0 %v2099_v0 }
 0x544   :  { %1871 = vmatpush3.bf16.msra.mxu1 %v1983_v31 }
 0x545   :  { %1896 = vmatprep.subr.bf16.mxu1 %v2099_v0 }
 0x5f6   :  { %v985_v33 = vpop.f32.mrb[20].mxu0 }
 0x5f7   :  { %v986_v34 = vadd.f32 %v1425_v32, %v985_v33  ;;  %v1814_v35 = vpop.f32.mrb[21].mxu0 }
 0x5f8   :  { %v988_v36 = vpop.f32.mrb[22].mxu0 }
 0x5f9   :  { %vm1032_vm11 = vcmp.ge.f32.partialorder %v986_v34, 0.0  ;;  %v1033_v37 = vmul.f32 0.2, %v986_v34  ;;  %v1815_v38 = vpop.f32.mrb[23].mxu0 }
 0x5fa   :  { %v1026_v39 = vpop.f32.mrb[20].mxu1 }
 0x5fb   :  { %v1034_v40 = vsel %vm1032_vm11, %v986_v34, %v1033_v37  ;;  %v1027_v41 = vadd.f32 %v1425_v32, %v1026_v39  ;;  %v1834_v42 = vpop.f32.mrb[21].mxu1 }
 0x5fc   :  { %v1057_v44 = vpack.c.bf16 %v1034_v40, %v1034_v40  ;;  %v1029_v45 = vpop.f32.mrb[22].mxu1 }
 0x5fd   :  { %vm1035_vm12 = vcmp.ge.f32.partialorder %v1027_v41, 0.0  ;;  %v1036_v46 = vmul.f32 0.2, %v1027_v41  ;;  %v1835_v47 = vpop.f32.mrb[23].mxu1 }
 0x5fe   :  { %1853 = vmatmul.mubr.bf16.vlgmr.msra.gmra.mrb[24].mxu0 %v1057_v44 }
 0x5ff   :  { %v1037_v48 = vsel %vm1035_vm12, %v1027_v41, %v1036_v46  ;;  %1877 = vmatpush3.bf16.msra.mxu0 %v1984_v43  ;;  %1892 = vmatprep.mubr.msk.bf16.mxu0 %vm2100_vm0, %v2099_v0 }
 0x600   :  { %v1152_v50 = vpack.c.bf16 %v1037_v48, %v1037_v48  ;;  %1878 = vmatprep.subr.bf16.mxu0 %v2099_v0 }
 0x602   :  { %1873 = vmatmul.mubr.bf16.vlgmr.msra.gmra.mrb[24].mxu1 %v1152_v50 }
 0x603   :  { %1879 = vmatpush3.bf16.msra.mxu0 %v1985_v49  ;;  %1897 = vmatpush3.bf16.msra.mxu1 %v1984_v43 }
 0x604   :  { %1880 = vmatprep.subr.bf16.mxu0 %v2099_v0  ;;  %1898 = vmatprep.subr.bf16.mxu1 %v2099_v0 }
 0x605   :  { %1912 = vmatprep.mubr.msk.bf16.mxu1 %vm2100_vm0, %v2099_v0 }
 0x607   :  { %1881 = vmatpush3.bf16.msra.mxu0 %v1986_v51  ;;  %1899 = vmatpush3.bf16.msra.mxu1 %v1985_v49 }
 0x608   :  { %1882 = vmatprep.subr.bf16.mxu0 %v2099_v0  ;;  %1900 = vmatprep.subr.bf16.mxu1 %v2099_v0 }
 0x60b   :  { %1883 = vmatpush3.bf16.msra.mxu0 %v1987_v52  ;;  %1901 = vmatpush3.bf16.msra.mxu1 %v1986_v51 }
 0x60c   :  { %1884 = vmatprep.subr.bf16.mxu0 %v2099_v0  ;;  %1902 = vmatprep.subr.bf16.mxu1 %v2099_v0 }
 0x60f   :  { %1885 = vmatpush3.bf16.msra.mxu0 %v1988_v53  ;;  %1903 = vmatpush3.bf16.msra.mxu1 %v1987_v52 }
 0x610   :  { %1886 = vmatprep.subr.bf16.mxu0 %v2099_v0  ;;  %1904 = vmatprep.subr.bf16.mxu1 %v2099_v0 }
 0x613   :  { %1887 = vmatpush3.bf16.msra.mxu0 %v1989_v54  ;;  %1905 = vmatpush3.bf16.msra.mxu1 %v1988_v53 }
 0x614   :  { %1888 = vmatprep.subr.bf16.mxu0 %v2099_v0  ;;  %1906 = vmatprep.subr.bf16.mxu1 %v2099_v0 }
 0x617   :  { %1907 = vmatpush3.bf16.msra.mxu1 %v1989_v54  ;;  %1889 = vmatpush3.bf16.msra.mxu0 %v1990_v55 }
 0x618   :  { %1908 = vmatprep.subr.bf16.mxu1 %v2099_v0  ;;  %1890 = vmatprep.subr.bf16.mxu0 %v2099_v0 }
 0x61b   :  { %1909 = vmatpush3.bf16.msra.mxu1 %v1990_v55  ;;  %1891 = vmatpush3.bf16.msra.mxu0 %v1991_v56 }
 0x61c   :  { %1910 = vmatprep.subr.bf16.mxu1 %v2099_v0 }
 0x61f   :  { %1911 = vmatpush3.bf16.msra.mxu1 %v1991_v56 }
 0x6d1   :  { %v1146_v58 = vpop.f32.mrb[24].mxu0 }
 0x6d2   :  { %v1147_v59 = vadd.f32 %v1434_v57, %v1146_v58  ;;  %v1854_v60 = vpop.f32.mrb[25].mxu0 }
 0x6d3   :  { %v1149_v61 = vpop.f32.mrb[26].mxu0 }
 0x6d4   :  { %vm1193_vm13 = vcmp.ge.f32.partialorder %v1147_v59, 0.0  ;;  %v1194_v62 = vmul.f32 0.2, %v1147_v59  ;;  %v1855_v63 = vpop.f32.mrb[27].mxu0 }
 0x6d5   :  { %v1187_v1 = vpop.f32.mrb[24].mxu1 }
 0x6d6   :  { %v1195_v2 = vsel %vm1193_vm13, %v1147_v59, %v1194_v62  ;;  %v1188_v3 = vadd.f32 %v1434_v57, %v1187_v1  ;;  %v1874_v4 = vpop.f32.mrb[25].mxu1 }
 0x6d7   :  { %v1218_v5 = vpack.c.bf16 %v1195_v2, %v1195_v2  ;;  %v1190_v6 = vpop.f32.mrb[26].mxu1 }
 0x6d8   :  { %vm1196_vm14 = vcmp.ge.f32.partialorder %v1188_v3, 0.0  ;;  %v1197_v7 = vmul.f32 0.2, %v1188_v3  ;;  %v1875_v0 = vpop.f32.mrb[27].mxu1 }
 0x6d9   :  { %1893 = vmatmul.mubr.bf16.vlgmr.msra.gmra.mrb[28].mxu0 %v1218_v5 }
 0x6da   :  { %v1198_v8 = vsel %vm1196_vm14, %v1188_v3, %v1197_v7 }
 0x6db   :  { %v1313_v9 = vpack.c.bf16 %v1198_v8, %v1198_v8 }
 0x6dd   :  { %1913 = vmatmul.mubr.bf16.vlgmr.msra.gmra.mrb[28].mxu1 %v1313_v9 }
 0x7ac   :  { %v1307_v11 = vpop.f32.mrb[28].mxu0 }
 0x7ad   :  { %v1308_v12 = vadd.f32 %v1443_v10, %v1307_v11  ;;  %v1894_v13 = vpop.f32.mrb[29].mxu0 }
 0x7ae   :  { %v1310_v14 = vpop.f32.mrb[30].mxu0 }
 0x7af   :  { %vm1354_vm15 = vcmp.ge.f32.partialorder %v1308_v12, 0.0  ;;  %v1355_v15 = vmul.f32 0.2, %v1308_v12  ;;  %v1895_v16 = vpop.f32.mrb[31].mxu0 }
 0x7b0   :  { %v1348_v17 = vpop.f32.mrb[28].mxu1 }
 0x7b1   :  { %v1349_v18 = vadd.f32 %v1443_v10, %v1348_v17  ;;  %v1914_v19 = vpop.f32.mrb[29].mxu1  ;;  %v1356_v20 = vsel %vm1354_vm15, %v1308_v12, %v1355_v15 }
 0x7b2   :  { %v1351_v21 = vpop.f32.mrb[30].mxu1  ;;  %1360 = vst [vmem:[#allocation8] sm:$0xff] %v1356_v20 }
 0x7b3   :  { %vm1357_vm0 = vcmp.ge.f32.partialorder %v1349_v18, 0.0  ;;  %v1358_v22 = vmul.f32 0.2, %v1349_v18  ;;  %v1915_v23 = vpop.f32.mrb[31].mxu1 }
 0x7b5   :  { %v1359_v24 = vsel %vm1357_vm0, %v1349_v18, %v1358_v22 }
 0x7b6   :  { %1361 = vst [vmem:[#allocation8 + $0x8] sm:$0xff] %v1359_v24 }
 0x7b7   :  { %2073 = shalt.err (!%p2070_p0)
}
 0x7b8   :  { %s2074_s29 = scalar_lea.hbm %s2339_s3, 256 }
 0x7b9   :  { %p2075_p1 = scmp.ne.s32.totalorder %s2339_s3, %s2074_s29  ;;  %p2078_p2 = scmp.lt.u32.totalorder %s2074_s29, %s2339_s3 }
 0x7bb   :  { %p2080_p3 = pnand %p2078_p2, %p2075_p1 }
 0x7bd   :  { %2083 = shalt.err (!%p2080_p3)
}
 0x7be   :  { %1373 = dma.vmem_to_hbm [thread:$0]  %s1368_s25, 256, %s2339_s3, [#allocation4], %s2094_s1, %s2094_s1, %s2095_s9  }
 0x7bf   :  { %2088 = dma.done.wait [#allocation4], 256  }
 0x7c0   :  { %2089 = vsyncadd [#allocation4], 4294967040 }
 0x7c1   :  { %1377 = vsyncpa [#allocation3], 1 }
 0x7c2   :  { %1378 = vsyncpa [#allocation6], 1 }
 0x7c3   :  { %1379 = vsyncpa [#allocation4], 1 }

</bundles_post_ra>
